<compile_context>
chip_gen: v7x
topology: tpu7x:2x2x1
jax: 0.10.0
libtpu: 0.0.40
codegen_flags: <defaults>
</compile_context>

<pallas_src>
import math
import numpy as np
import jax
import jax.numpy as jnp
from jax.experimental import pallas as pl
from jax.experimental.pallas import tpu as pltpu


def _pick_q_tile(q):
    """Largest tile (<=1024, multiple of 8) dividing Q, else the full Q."""
    for cand in (1024, 512, 256, 128, 64, 32, 16, 8):
        if q >= cand and q % cand == 0:
            return cand
    return q


# --------------------------------------------------------------------------
# Fused kernel: weighted CE + cardinality error + L1 box loss + GIoU loss
# --------------------------------------------------------------------------
def _detr_loss_kernel(logits_ref, tgt_cls_ref, tgt_len_ref, boxes_ref,
                      si_ref, sf_ref, out_ref,
                      ce_num_ref, ce_den_ref, card_acc_ref):
    """
    Grid = (num_heads L, num_q_tiles).  Block views:
      logits_ref  : (1, B, TQ, C)   model class logits (any float dtype)
      tgt_cls_ref : (1, B, TQ, 1)   int32 per-query target class
      tgt_len_ref : (B, 1)          f32 #GT boxes per image (head-invariant)
      boxes_ref   : (1, 8, NPAD)    rows 0-3 src (cx,cy,w,h), rows 4-7 tgt
      si_ref      : (1,)  SMEM i32  [num_matched_boxes]
      sf_ref      : (2,)  SMEM f32  [1/num_boxes, eos_coef]
      out_ref     : (1, 8, 128)     packed losses: [0,0]=ce [0,1]=card
                                     [0,2]=bbox [0,3]=giou
    Scratch: ce_num (1,1), ce_den (1,1), card_acc (B,1) -- reset per head.
    """
    q_idx = pl.program_id(1)
    nq = pl.num_programs(1)

    @pl.when(q_idx == 0)
    def _init():
        ce_num_ref[...] = jnp.zeros_like(ce_num_ref)
        ce_den_ref[...] = jnp.zeros_like(ce_den_ref)
        card_acc_ref[...] = jnp.zeros_like(card_acc_ref)

    logits = logits_ref[0].astype(jnp.float32)                   # (B, TQ, C)
    tgt = tgt_cls_ref[0]                                         # (B, TQ, 1) i32
    bsz, tq, n_cls = logits.shape
    eos_coef = sf_ref[1]

    cls_iota = jax.lax.broadcasted_iota(jnp.int32, (bsz, tq, n_cls), 2)

    # --- weighted cross-entropy pieces (accumulated over Q tiles) ---
    # no-object logit is just the last lane; max over object classes is one
    # masked lane reduce; LSE max = max(obj_max, noobj).
    noobj = logits[:, :, n_cls - 1:n_cls]                        # (B,TQ,1)
    obj_max = jnp.max(jnp.where(cls_iota < n_cls - 1, logits, -jnp.inf),
                      axis=-1, keepdims=True)                    # (B,TQ,1)
    m = jnp.maximum(obj_max, noobj)
    lse = m + jnp.log(jnp.sum(jnp.exp(logits - m), axis=-1, keepdims=True))
    tgt_logit = jnp.sum(jnp.where(cls_iota == tgt, logits, 0.0),
                        axis=-1, keepdims=True)                  # (B,TQ,1)
    # empty_weight is [1, ..., 1, eos_coef] by construction of DetrLoss.
    # TODO(synk): keep a general per-class-weight gather if arbitrary weights
    # ever need to be supported.
    w = jnp.where(tgt == n_cls - 1, eos_coef, 1.0)               # (B,TQ,1)
    wnll = w * (lse - tgt_logit)

    def _sum_bq(x):                                              # (B,TQ,1)->(1,1)
        s = jnp.sum(x, axis=1, keepdims=True)                    # (B,1,1)
        return jnp.sum(s, axis=0, keepdims=True)[0]              # (1,1)

    ce_num_ref[...] += _sum_bq(wnll)
    ce_den_ref[...] += _sum_bq(w)

    # --- cardinality: argmax(-1) != no-object  <=>  obj_max >= noobj
    #     (first-index tie-break, same as torch.argmax) ---
    not_empty = (obj_max >= noobj).astype(jnp.float32)           # (B,TQ,1)
    card_acc_ref[...] += jnp.sum(not_empty, axis=1, keepdims=True)[:, 0]   # (B,1)

    @pl.when(q_idx == nq - 1)
    def _finalize():
        inv_nb = sf_ref[0]
        n_valid = si_ref[0]

        loss_ce = ce_num_ref[...] / ce_den_ref[...]              # (1,1)
        card_err = jnp.sum(jnp.abs(card_acc_ref[...] - tgt_len_ref[...]),
                           axis=0, keepdims=True) * (1.0 / bsz)  # (1,1)

        # --- box losses, lane-dense: coords on sublanes, boxes on lanes ---
        bx = boxes_ref[0]                                        # (8, NPAD)
        npad = bx.shape[-1]
        lane = jax.lax.broadcasted_iota(jnp.int32, (1, npad), 1)
        valid_b = lane < n_valid
        valid_f = valid_b.astype(jnp.float32)

        src = bx[0:4, :]                                         # (4, NPAD)
        tgt_b = bx[4:8, :]

        l1 = jnp.sum(jnp.abs(src - tgt_b) * valid_f, axis=1, keepdims=True)
        loss_bbox = jnp.sum(l1, axis=0, keepdims=True) * inv_nb  # (1,1)

        def corners(b):
            cx, cy, w_, h_ = b[0:1, :], b[1:2, :], b[2:3, :], b[3:4, :]
            return cx - 0.5 * w_, cy - 0.5 * h_, cx + 0.5 * w_, cy + 0.5 * h_

        sx0, sy0, sx1, sy1 = corners(src)
        tx0, ty0, tx1, ty1 = corners(tgt_b)
        area_s = (sx1 - sx0) * (sy1 - sy0)
        area_t = (tx1 - tx0) * (ty1 - ty0)
        inter = (jnp.maximum(jnp.minimum(sx1, tx1) - jnp.maximum(sx0, tx0), 0.0)
                 * jnp.maximum(jnp.minimum(sy1, ty1) - jnp.maximum(sy0, ty0), 0.0))
        union = area_s + area_t - inter
        enc = (jnp.maximum(jnp.maximum(sx1, tx1) - jnp.minimum(sx0, tx0), 0.0)
               * jnp.maximum(jnp.maximum(sy1, ty1) - jnp.minimum(sy0, ty0), 0.0))
        # Padded lanes hold all-zero boxes (union == enc == 0); keep those
        # divisions finite.  Valid lanes are untouched -> exact torch math.
        union_s = jnp.where(valid_b, union, 1.0)
        enc_s = jnp.where(valid_b, enc, 1.0)
        giou = inter / union_s - (enc_s - union_s) / enc_s
        loss_giou = jnp.sum((1.0 - giou) * valid_f,
                            axis=1, keepdims=True) * inv_nb      # (1,1)

        # Pack the four scalars into one lane-aligned (8,128) output tile.
        sub_i = jax.lax.broadcasted_iota(jnp.int32, (8, 128), 0)
        lane_i = jax.lax.broadcasted_iota(jnp.int32, (8, 128), 1)
        row0 = sub_i == 0
        packed = (jnp.where(row0 & (lane_i == 0), 1.0, 0.0) * loss_ce
                  + jnp.where(row0 & (lane_i == 1), 1.0, 0.0) * card_err
                  + jnp.where(row0 & (lane_i == 2), 1.0, 0.0) * loss_bbox
                  + jnp.where(row0 & (lane_i == 3), 1.0, 0.0) * loss_giou)
        out_ref[0] = packed


def _run_fused_detr_losses(logits, target_classes, target_lengths, boxes,
                           n_valid, inv_num_boxes, eos_coef):
    """logits (L,B,Q,C) any float dtype; target_classes (L,B,Q,1) i32;
    target_lengths (B,1) f32; boxes (L,8,NPAD) f32."""
    L, B, Q, C = logits.shape
    npad = boxes.shape[-1]
    tq = _pick_q_tile(Q)
    nq = Q // tq

    out = pl.pallas_call(
        _detr_loss_kernel,
        out_shape=jax.ShapeDtypeStruct((L, 8, 128), jnp.float32),
        grid=(L, nq),
        in_specs=[
            pl.BlockSpec((1, B, tq, C), lambda l, q: (l, 0, q, 0)),
            pl.BlockSpec((1, B, tq, 1), lambda l, q: (l, 0, q, 0)),
            pl.BlockSpec((B, 1), lambda l, q: (0, 0)),
            pl.BlockSpec((1, 8, npad), lambda l, q: (l, 0, 0)),
            pl.BlockSpec(memory_space=pltpu.MemorySpace.SMEM),
            pl.BlockSpec(memory_space=pltpu.MemorySpace.SMEM),
        ],
        out_specs=pl.BlockSpec((1, 8, 128), lambda l, q: (l, 0, 0)),
        scratch_shapes=[
            pltpu.VMEM((1, 1), jnp.float32),   # CE numerator
            pltpu.VMEM((1, 1), jnp.float32),   # CE denominator (sum of weights)
            pltpu.VMEM((B, 1), jnp.float32),   # per-image predicted-box count
        ],
        compiler_params=pltpu.CompilerParams(
            dimension_semantics=("parallel", "arbitrary"),
            vmem_limit_bytes=32 * 1024 * 1024),
    )(logits,
      target_classes.astype(jnp.int32),
      target_lengths.astype(jnp.float32),
      boxes.astype(jnp.float32),
      jnp.asarray([n_valid], jnp.int32),
      jnp.asarray([inv_num_boxes, eos_coef], jnp.float32))
    return out[:, 0, 0], out[:, 0, 1], out[:, 0, 2], out[:, 0, 3]


# --------------------------------------------------------------------------
# DetrLoss wrapper (host-side index plumbing + single fused kernel dispatch)
# --------------------------------------------------------------------------
class DetrLossPallas:
    def __init__(self, matcher, num_classes, eos_coef, losses,
                 max_target_boxes=128):
        self.matcher = matcher
        self.num_classes = num_classes
        self.eos_coef = float(eos_coef)
        self.losses = losses
        # fixed lane-padded capacity for matched boxes -> static kernel shapes
        self.max_target_boxes = int(math.ceil(max(max_target_boxes, 1) / 128.0)) * 128

    # mirrors _get_source_permutation_idx + the target_classes scatter
    def _target_classes_np(self, B, Q, targets, indices):
        tc = np.full((B, Q, 1), self.num_classes, dtype=np.int32)
        for b, (src, tgt) in enumerate(indices):
            src = np.asarray(src, np.int64)
            tgt = np.asarray(tgt, np.int64)
            labels = np.asarray(targets[b]['class_labels'])
            tc[b, src, 0] = labels[tgt]
        return tc

    # mirrors outputs['pred_boxes'][idx] / torch.cat([t['boxes'][i] ...]) into a
    # lane-dense (8, NPAD) layout (rows 0-3 src, rows 4-7 tgt; boxes on lanes).
    # TODO(synk): this gather is host-side numpy index plumbing; an on-device
    # scalar-prefetch gather would remove the host round-trip entirely.
    def _boxes_np(self, pred_boxes, targets, indices):
        buf = np.zeros((8, self.max_target_boxes), np.float32)
        off = 0
        pred_np = np.asarray(pred_boxes, np.float32)
        for b, (src, tgt) in enumerate(indices):
            src = np.asarray(src, np.int64)
            tgt = np.asarray(tgt, np.int64)
            n = src.shape[0]
            if n == 0:
                continue
            buf[0:4, off:off + n] = pred_np[b][src].T
            buf[4:8, off:off + n] = np.asarray(targets[b]['boxes'], np.float32)[tgt].T
            off += n
        return buf

    def __call__(self, outputs, targets):
        outputs_without_aux = {k: v for k, v in outputs.items()
                               if k != 'auxiliary_outputs'}
        indices = self.matcher(outputs_without_aux, targets)
        total_gt = int(sum(len(t['class_labels']) for t in targets))
        num_boxes = float(max(total_gt, 1))
        assert total_gt <= self.max_target_boxes

        # TODO(synk): the Hungarian matcher (scipy linear_sum_assignment over a
        # CE/L1/GIoU cost) is an injected external module with no clean Pallas
        # equivalent; it stays host-side.
        heads = [('', outputs, indices)]
        if 'auxiliary_outputs' in outputs:
            for i, aux in enumerate(outputs['auxiliary_outputs']):
                heads.append((f'_{i}', aux, self.matcher(aux, targets)))

        logits0 = heads[0][1]['logits']
        B, Q, C = logits0.shape
        assert C == self.num_classes + 1
        want_boxes = 'boxes' in self.losses

        logits_l, tc_l, boxes_l = [], [], []
        for _, head_out, head_idx in heads:
            logits_l.append(jnp.asarray(head_out['logits']))   # native dtype; kernel up-casts
            tc_l.append(self._target_classes_np(B, Q, targets, head_idx))
            if want_boxes:
                boxes_l.append(self._boxes_np(head_out['pred_boxes'], targets, head_idx))
            else:
                boxes_l.append(np.zeros((8, self.max_target_boxes), np.float32))

        logits_s = jnp.stack(logits_l, axis=0)                       # (L,B,Q,C)
        tc_s = jnp.asarray(np.stack(tc_l, axis=0))                   # (L,B,Q,1)
        boxes_s = jnp.asarray(np.stack(boxes_l, axis=0))             # (L,8,NPAD)
        tgt_len = jnp.asarray(np.asarray(
            [len(t['class_labels']) for t in targets],
            np.float32).reshape(B, 1))

        ce, card, bbox, giou = _run_fused_detr_losses(
            logits_s, tc_s, tgt_len, boxes_s,
            n_valid=total_gt if want_boxes else 0,
            inv_num_boxes=1.0 / num_boxes,
            eos_coef=self.eos_coef)

        losses = {}
        for h, (sfx, _, _) in enumerate(heads):
            if 'labels' in self.losses:
                losses[f'loss_ce{sfx}'] = ce[h]
            if 'cardinality' in self.losses:
                losses[f'cardinality_error{sfx}'] = card[h]
            if want_boxes:
                losses[f'loss_bbox{sfx}'] = bbox[h]
                losses[f'loss_giou{sfx}'] = giou[h]
        # TODO(synk): 'masks' loss (sigmoid focal + dice over bilinearly-resized,
        # NestedTensor-padded masks) is not implemented as a Pallas kernel.
        return losses


# --------------------------------------------------------------------------
# Pure-numpy reference (same semantics as the PyTorch module), per head
# --------------------------------------------------------------------------
def _reference_losses(outputs, targets, indices, num_boxes, num_classes, eos_coef):
    logits = np.asarray(outputs['logits'], np.float64)
    pred_boxes = np.asarray(outputs['pred_boxes'], np.float64)
    B, Q, C = logits.shape

    tc = np.full((B, Q), num_classes, dtype=np.int64)
    for b, (src, tgt) in enumerate(indices):
        tc[b, np.asarray(src)] = np.asarray(targets[b]['class_labels'])[np.asarray(tgt)]
    weight = np.ones(C, np.float64)
    weight[-1] = eos_coef
    flat = logits.reshape(-1, C)
    flat_tc = tc.reshape(-1)
    m = flat.max(-1, keepdims=True)
    lse = (m + np.log(np.exp(flat - m).sum(-1, keepdims=True)))[:, 0]
    nll = lse - flat[np.arange(flat.shape[0]), flat_tc]
    w = weight[flat_tc]
    loss_ce = (w * nll).sum() / w.sum()

    tgt_len = np.array([len(t['class_labels']) for t in targets], np.float64)
    card_pred = (logits.argmax(-1) != C - 1).sum(1).astype(np.float64)
    card_err = np.abs(card_pred - tgt_len).mean()

    src_b = np.concatenate([pred_boxes[b][np.asarray(src)]
                            for b, (src, _) in enumerate(indices)], 0)
    tgt_b = np.concatenate([np.asarray(targets[b]['boxes'], np.float64)[np.asarray(tgt)]
                            for b, (_, tgt) in enumerate(indices)], 0)
    loss_bbox = np.abs(src_b - tgt_b).sum() / num_boxes

    def corners(b):
        cx, cy, w_, h_ = b[:, 0], b[:, 1], b[:, 2], b[:, 3]
        return np.stack([cx - 0.5 * w_, cy - 0.5 * h_,
                         cx + 0.5 * w_, cy + 0.5 * h_], -1)
    sb, tb = corners(src_b), corners(tgt_b)
    area_s = (sb[:, 2] - sb[:, 0]) * (sb[:, 3] - sb[:, 1])
    area_t = (tb[:, 2] - tb[:, 0]) * (tb[:, 3] - tb[:, 1])
    lt = np.maximum(sb[:, :2], tb[:, :2])
    rb = np.minimum(sb[:, 2:], tb[:, 2:])
    wh = np.clip(rb - lt, 0, None)
    inter = wh[:, 0] * wh[:, 1]
    union = area_s + area_t - inter
    iou = inter / union
    lt2 = np.minimum(sb[:, :2], tb[:, :2])
    rb2 = np.maximum(sb[:, 2:], tb[:, 2:])
    wh2 = np.clip(rb2 - lt2, 0, None)
    enc = wh2[:, 0] * wh2[:, 1]
    giou = iou - (enc - union) / enc
    loss_giou = (1.0 - giou).sum() / num_boxes

    return {'loss_ce': loss_ce, 'cardinality_error': card_err,
            'loss_bbox': loss_bbox, 'loss_giou': loss_giou}


if __name__ == "__main__":
    num_classes = 4
    eos_coef = 0.1
    B, Q = 2, 8
    C = num_classes + 1

    key = jax.random.PRNGKey(0)
    k_main, k_aux0, k_aux1, k_lab0, k_lab1, k_tb0, k_tb1 = jax.random.split(key, 7)

    def make_head(k):
        kl, kb = jax.random.split(k)
        return {'logits': jax.random.normal(kl, (B, Q, C), dtype=jnp.float32),
                'pred_boxes': jax.nn.sigmoid(
                    jax.random.normal(kb, (B, Q, 4), dtype=jnp.float32))}

    def make_boxes(k, n):
        cxcy = jax.random.uniform(k, (n, 2), minval=0.3, maxval=0.7)
        wh = jax.random.uniform(jax.random.fold_in(k, 1), (n, 2),
                                minval=0.05, maxval=0.3)
        return jnp.concatenate([cxcy, wh], axis=-1).astype(jnp.float32)

    outputs = make_head(k_main)
    outputs['auxiliary_outputs'] = [make_head(k_aux0), make_head(k_aux1)]

    targets = [
        {'class_labels': jax.random.randint(k_lab0, (3,), 0, num_classes),
         'boxes': make_boxes(k_tb0, 3)},
        {'class_labels': jax.random.randint(k_lab1, (2,), 0, num_classes),
         'boxes': make_boxes(k_tb1, 2)},
    ]

    def identity_matcher(outs, tgts):
        # Deterministic stand-in for DetrHungarianMatcher (external dependency).
        return [(np.arange(len(t['class_labels'])),
                 np.arange(len(t['class_labels']))) for t in tgts]

    criterion = DetrLossPallas(matcher=identity_matcher, num_classes=num_classes,
                               eos_coef=eos_coef,
                               losses=['labels', 'cardinality', 'boxes'])
    losses = criterion(outputs, targets)
    losses = jax.tree_util.tree_map(jax.block_until_ready, losses)

    num_boxes = float(max(sum(len(t['class_labels']) for t in targets), 1))
    all_heads = [('', outputs)] + [(f'_{i}', aux)
                                   for i, aux in enumerate(outputs['auxiliary_outputs'])]
    for sfx, head in all_heads:
        idx = identity_matcher(head, targets)
        ref = _reference_losses(head, targets, idx, num_boxes, num_classes, eos_coef)
        for name in ('loss_ce', 'cardinality_error', 'loss_bbox', 'loss_giou'):
            got = float(np.asarray(losses[f'{name}{sfx}']))
            exp = float(ref[name])
            assert np.allclose(got, exp, rtol=1e-4, atol=1e-4), \
                f"mismatch {name}{sfx}: kernel={got} ref={exp}"
    print("KERNEL_OK")
</pallas_src>

<mosaic_0001>
module attributes {stable_mosaic.version = 11 : i64} {
  func.func @_detr_loss_kernel(%arg0: i32, %arg1: i32, %arg2: memref<1x2x8x5xf32, #tpu.memory_space<vmem>>, %arg3: memref<1x2x8x1xi32, #tpu.memory_space<vmem>>, %arg4: memref<2x1xf32, #tpu.memory_space<vmem>>, %arg5: memref<1x8x128xf32, #tpu.memory_space<vmem>>, %arg6: memref<1xi32, #tpu.memory_space<smem>>, %arg7: memref<2xf32, #tpu.memory_space<smem>>, %arg8: memref<1x8x128xf32, #tpu.memory_space<vmem>>, %arg9: memref<1x1xf32, #tpu.memory_space<vmem>>, %arg10: memref<1x1xf32, #tpu.memory_space<vmem>>, %arg11: memref<2x1xf32, #tpu.memory_space<vmem>>) attributes {dimension_semantics = [#tpu.dimension_semantics<parallel>, #tpu.dimension_semantics<arbitrary>], iteration_bounds = array<i64: 3, 1>, scalar_prefetch = 0 : i64, scratch_operands = 3 : i64, tpu.core_type = #tpu.core_type<tc>, window_params = [{transform_indices = @transform_0, window_bounds = array<i64: 1, 2, 8, 5>}, {transform_indices = @transform_1, window_bounds = array<i64: 1, 2, 8, 1>}, {pipeline_mode = #tpu.pipeline_mode<synchronous>, transform_indices = @transform_2, window_bounds = array<i64: 2, 1>}, {transform_indices = @transform_3, window_bounds = array<i64: 1, 8, 128>}, {transform_indices = @transform_4, window_bounds = array<i64: 1>}, {transform_indices = @transform_5, window_bounds = array<i64: 2>}, {transform_indices = @transform_6, window_bounds = array<i64: 1, 8, 128>}]} {
    %c0_i32 = arith.constant 0 : i32
    %0 = arith.cmpi eq, %arg1, %c0_i32 : i32
    %1 = arith.extui %0 : i1 to i32
    %c0_i32_0 = arith.constant 0 : i32
    %2 = arith.cmpi ne, %1, %c0_i32_0 : i32
    scf.if %2 {
      %cst_33 = arith.constant 0.000000e+00 : f32
      %65 = vector.broadcast %cst_33 : f32 to vector<1x1xf32>
      %c0_34 = arith.constant 0 : index
      %c0_35 = arith.constant 0 : index
      %66 = vector.load %arg9[%c0_34, %c0_35] : memref<1x1xf32, #tpu.memory_space<vmem>>, vector<1x1xf32>
      tpu.vector_store %arg9[%c0_34, %c0_35], %65 {strides = array<i32>} : memref<1x1xf32, #tpu.memory_space<vmem>>, vector<1x1xf32>,
      %cst_36 = arith.constant 0.000000e+00 : f32
      %67 = vector.broadcast %cst_36 : f32 to vector<1x1xf32>
      %c0_37 = arith.constant 0 : index
      %c0_38 = arith.constant 0 : index
      %68 = vector.load %arg10[%c0_37, %c0_38] : memref<1x1xf32, #tpu.memory_space<vmem>>, vector<1x1xf32>
      tpu.vector_store %arg10[%c0_37, %c0_38], %67 {strides = array<i32>} : memref<1x1xf32, #tpu.memory_space<vmem>>, vector<1x1xf32>,
      %cst_39 = arith.constant 0.000000e+00 : f32
      %69 = vector.broadcast %cst_39 : f32 to vector<2x1xf32>
      %c0_40 = arith.constant 0 : index
      %c0_41 = arith.constant 0 : index
      %70 = vector.load %arg11[%c0_40, %c0_41] : memref<2x1xf32, #tpu.memory_space<vmem>>, vector<2x1xf32>
      tpu.vector_store %arg11[%c0_40, %c0_41], %69 {strides = array<i32>} : memref<2x1xf32, #tpu.memory_space<vmem>>, vector<2x1xf32>,
    } else {
    }
    %c0 = arith.constant 0 : index
    %c0_1 = arith.constant 0 : index
    %c0_2 = arith.constant 0 : index
    %c0_3 = arith.constant 0 : index
    %3 = vector.load %arg2[%c0, %c0_1, %c0_2, %c0_3] : memref<1x2x8x5xf32, #tpu.memory_space<vmem>>, vector<1x2x8x5xf32>
    %4 = vector.shape_cast %3 : vector<1x2x8x5xf32> to vector<2x8x5xf32>
    %c0_4 = arith.constant 0 : index
    %c0_5 = arith.constant 0 : index
    %c0_6 = arith.constant 0 : index
    %c0_7 = arith.constant 0 : index
    %5 = vector.load %arg3[%c0_4, %c0_5, %c0_6, %c0_7] : memref<1x2x8x1xi32, #tpu.memory_space<vmem>>, vector<1x2x8x1xi32>
    %6 = vector.shape_cast %5 : vector<1x2x8x1xi32> to vector<2x8x1xi32>
    %c1 = arith.constant 1 : index
    %7 = memref.load %arg7[%c1] : memref<2xf32, #tpu.memory_space<smem>>
    %8 = tpu.iota {dimensions = array<i32: 2>} : vector<2x8x5xi32>
    %9 = vector.extract_strided_slice %4 {offsets = [0, 0, 4], sizes = [2, 8, 1], strides = [1, 1, 1]} : vector<2x8x5xf32> to vector<2x8x1xf32>
    %c4_i32 = arith.constant 4 : i32
    %10 = vector.broadcast %c4_i32 : i32 to vector<2x8x5xi32>
    %11 = arith.cmpi slt, %8, %10 : vector<2x8x5xi32>
    %cst = arith.constant 0xFF800000 : f32
    %12 = vector.broadcast %cst : f32 to vector<2x8x5xf32>
    %13 = arith.select %11, %4, %12 : vector<2x8x5xi1>, vector<2x8x5xf32>
    %cst_8 = arith.constant dense<0xFF800000> : vector<2x8xf32>
    %14 = vector.multi_reduction <maximumf>, %13, %cst_8 [2] : vector<2x8x5xf32> to vector<2x8xf32>
    %15 = vector.shape_cast %14 : vector<2x8xf32> to vector<2x8x1xf32>
    %16 = arith.maximumf %15, %9 : vector<2x8x1xf32>
    %17 = vector.broadcast %16 : vector<2x8x1xf32> to vector<2x8x5xf32>
    %18 = arith.subf %4, %17 : vector<2x8x5xf32>
    %19 = math.exp %18 : vector<2x8x5xf32>
    %cst_9 = arith.constant dense<0.000000e+00> : vector<2x8xf32>
    %20 = vector.multi_reduction <add>, %19, %cst_9 [2] : vector<2x8x5xf32> to vector<2x8xf32>
    %21 = vector.shape_cast %20 : vector<2x8xf32> to vector<2x8x1xf32>
    %22 = math.log %21 : vector<2x8x1xf32>
    %23 = arith.addf %16, %22 : vector<2x8x1xf32>
    %24 = vector.broadcast %6 : vector<2x8x1xi32> to vector<2x8x5xi32>
    %25 = arith.cmpi eq, %8, %24 : vector<2x8x5xi32>
    %cst_10 = arith.constant 0.000000e+00 : f32
    %26 = vector.broadcast %cst_10 : f32 to vector<2x8x5xf32>
    %27 = arith.select %25, %4, %26 : vector<2x8x5xi1>, vector<2x8x5xf32>
    %cst_11 = arith.constant dense<0.000000e+00> : vector<2x8xf32>
    %28 = vector.multi_reduction <add>, %27, %cst_11 [2] : vector<2x8x5xf32> to vector<2x8xf32>
    %29 = vector.shape_cast %28 : vector<2x8xf32> to vector<2x8x1xf32>
    %c4_i32_12 = arith.constant 4 : i32
    %30 = vector.broadcast %c4_i32_12 : i32 to vector<2x8x1xi32>
    %31 = arith.cmpi eq, %6, %30 : vector<2x8x1xi32>
    %cst_13 = arith.constant 1.000000e+00 : f32
    %32 = vector.broadcast %7 : f32 to vector<2x8x1xf32>
    %33 = vector.broadcast %cst_13 : f32 to vector<2x8x1xf32>
    %34 = arith.select %31, %32, %33 : vector<2x8x1xi1>, vector<2x8x1xf32>
    %35 = arith.subf %23, %29 : vector<2x8x1xf32>
    %36 = arith.mulf %34, %35 : vector<2x8x1xf32>
    %c0_14 = arith.constant 0 : index
    %c0_15 = arith.constant 0 : index
    %37 = vector.load %arg9[%c0_14, %c0_15] : memref<1x1xf32, #tpu.memory_space<vmem>>, vector<1x1xf32>
    %cst_16 = arith.constant dense<0.000000e+00> : vector<2x1xf32>
    %38 = vector.multi_reduction <add>, %36, %cst_16 [1] : vector<2x8x1xf32> to vector<2x1xf32>
    %39 = vector.shape_cast %38 : vector<2x1xf32> to vector<2x1x1xf32>
    %cst_17 = arith.constant dense<0.000000e+00> : vector<1x1xf32>
    %40 = vector.multi_reduction <add>, %39, %cst_17 [0] : vector<2x1x1xf32> to vector<1x1xf32>
    %41 = vector.shape_cast %40 : vector<1x1xf32> to vector<1x1x1xf32>
    %42 = vector.shape_cast %41 : vector<1x1x1xf32> to vector<1x1xf32>
    %43 = arith.addf %37, %42 : vector<1x1xf32>
    %c0_18 = arith.constant 0 : index
    %c0_19 = arith.constant 0 : index
    %44 = vector.load %arg9[%c0_18, %c0_19] : memref<1x1xf32, #tpu.memory_space<vmem>>, vector<1x1xf32>
    tpu.vector_store %arg9[%c0_18, %c0_19], %43 {strides = array<i32>} : memref<1x1xf32, #tpu.memory_space<vmem>>, vector<1x1xf32>,
    %c0_20 = arith.constant 0 : index
    %c0_21 = arith.constant 0 : index
    %45 = vector.load %arg10[%c0_20, %c0_21] : memref<1x1xf32, #tpu.memory_space<vmem>>, vector<1x1xf32>
    %cst_22 = arith.constant dense<0.000000e+00> : vector<2x1xf32>
    %46 = vector.multi_reduction <add>, %34, %cst_22 [1] : vector<2x8x1xf32> to vector<2x1xf32>
    %47 = vector.shape_cast %46 : vector<2x1xf32> to vector<2x1x1xf32>
    %cst_23 = arith.constant dense<0.000000e+00> : vector<1x1xf32>
    %48 = vector.multi_reduction <add>, %47, %cst_23 [0] : vector<2x1x1xf32> to vector<1x1xf32>
    %49 = vector.shape_cast %48 : vector<1x1xf32> to vector<1x1x1xf32>
    %50 = vector.shape_cast %49 : vector<1x1x1xf32> to vector<1x1xf32>
    %51 = arith.addf %45, %50 : vector<1x1xf32>
    %c0_24 = arith.constant 0 : index
    %c0_25 = arith.constant 0 : index
    %52 = vector.load %arg10[%c0_24, %c0_25] : memref<1x1xf32, #tpu.memory_space<vmem>>, vector<1x1xf32>
    tpu.vector_store %arg10[%c0_24, %c0_25], %51 {strides = array<i32>} : memref<1x1xf32, #tpu.memory_space<vmem>>, vector<1x1xf32>,
    %53 = arith.cmpf oge, %15, %9 : vector<2x8x1xf32>
    %54 = arith.extui %53 : vector<2x8x1xi1> to vector<2x8x1xi32>
    %55 = arith.sitofp %54 : vector<2x8x1xi32> to vector<2x8x1xf32>
    %c0_26 = arith.constant 0 : index
    %c0_27 = arith.constant 0 : index
    %56 = vector.load %arg11[%c0_26, %c0_27] : memref<2x1xf32, #tpu.memory_space<vmem>>, vector<2x1xf32>
    %cst_28 = arith.constant dense<0.000000e+00> : vector<2x1xf32>
    %57 = vector.multi_reduction <add>, %55, %cst_28 [1] : vector<2x8x1xf32> to vector<2x1xf32>
    %58 = vector.shape_cast %57 : vector<2x1xf32> to vector<2x1x1xf32>
    %59 = vector.shape_cast %58 : vector<2x1x1xf32> to vector<2x1xf32>
    %60 = arith.addf %56, %59 : vector<2x1xf32>
    %c0_29 = arith.constant 0 : index
    %c0_30 = arith.constant 0 : index
    %61 = vector.load %arg11[%c0_29, %c0_30] : memref<2x1xf32, #tpu.memory_space<vmem>>, vector<2x1xf32>
    tpu.vector_store %arg11[%c0_29, %c0_30], %60 {strides = array<i32>} : memref<2x1xf32, #tpu.memory_space<vmem>>, vector<2x1xf32>,
    %c0_i32_31 = arith.constant 0 : i32
    %62 = arith.cmpi eq, %arg1, %c0_i32_31 : i32
    %63 = arith.extui %62 : i1 to i32
    %c0_i32_32 = arith.constant 0 : i32
    %64 = arith.cmpi ne, %63, %c0_i32_32 : i32
    scf.if %64 {
      %c0_33 = arith.constant 0 : index
      %65 = memref.load %arg7[%c0_33] : memref<2xf32, #tpu.memory_space<smem>>
      %c0_34 = arith.constant 0 : index
      %66 = memref.load %arg6[%c0_34] : memref<1xi32, #tpu.memory_space<smem>>
      %c0_35 = arith.constant 0 : index
      %c0_36 = arith.constant 0 : index
      %67 = vector.load %arg9[%c0_35, %c0_36] : memref<1x1xf32, #tpu.memory_space<vmem>>, vector<1x1xf32>
      %c0_37 = arith.constant 0 : index
      %c0_38 = arith.constant 0 : index
      %68 = vector.load %arg10[%c0_37, %c0_38] : memref<1x1xf32, #tpu.memory_space<vmem>>, vector<1x1xf32>
      %69 = arith.divf %67, %68 : vector<1x1xf32>
      %c0_39 = arith.constant 0 : index
      %c0_40 = arith.constant 0 : index
      %70 = vector.load %arg11[%c0_39, %c0_40] : memref<2x1xf32, #tpu.memory_space<vmem>>, vector<2x1xf32>
      %c0_41 = arith.constant 0 : index
      %c0_42 = arith.constant 0 : index
      %71 = vector.load %arg4[%c0_41, %c0_42] : memref<2x1xf32, #tpu.memory_space<vmem>>, vector<2x1xf32>
      %72 = arith.subf %70, %71 : vector<2x1xf32>
      %73 = math.absf %72 : vector<2x1xf32>
      %cst_43 = arith.constant dense<0.000000e+00> : vector<1xf32>
      %74 = vector.multi_reduction <add>, %73, %cst_43 [0] : vector<2x1xf32> to vector<1xf32>
      %75 = vector.shape_cast %74 : vector<1xf32> to vector<1x1xf32>
      %cst_44 = arith.constant 5.000000e-01 : f32
      %76 = vector.broadcast %cst_44 : f32 to vector<1x1xf32>
      %77 = arith.mulf %75, %76 : vector<1x1xf32>
      %c0_45 = arith.constant 0 : index
      %c0_46 = arith.constant 0 : index
      %c0_47 = arith.constant 0 : index
      %78 = vector.load %arg5[%c0_45, %c0_46, %c0_47] : memref<1x8x128xf32, #tpu.memory_space<vmem>>, vector<1x8x128xf32>
      %79 = vector.shape_cast %78 : vector<1x8x128xf32> to vector<8x128xf32>
      %80 = tpu.iota {dimensions = array<i32: 1>} : vector<1x128xi32>
      %81 = vector.broadcast %66 : i32 to vector<1x128xi32>
      %82 = arith.cmpi slt, %80, %81 : vector<1x128xi32>
      %83 = arith.extui %82 : vector<1x128xi1> to vector<1x128xi32>
      %84 = arith.sitofp %83 : vector<1x128xi32> to vector<1x128xf32>
      %85 = vector.extract_strided_slice %79 {offsets = [0, 0], sizes = [4, 128], strides = [1, 1]} : vector<8x128xf32> to vector<4x128xf32>
      %86 = vector.extract_strided_slice %79 {offsets = [4, 0], sizes = [4, 128], strides = [1, 1]} : vector<8x128xf32> to vector<4x128xf32>
      %87 = arith.subf %85, %86 : vector<4x128xf32>
      %88 = math.absf %87 : vector<4x128xf32>
      %89 = vector.broadcast %84 : vector<1x128xf32> to vector<4x128xf32>
      %90 = arith.mulf %88, %89 : vector<4x128xf32>
      %cst_48 = arith.constant dense<0.000000e+00> : vector<4xf32>
      %91 = vector.multi_reduction <add>, %90, %cst_48 [1] : vector<4x128xf32> to vector<4xf32>
      %92 = vector.shape_cast %91 : vector<4xf32> to vector<4x1xf32>
      %cst_49 = arith.constant dense<0.000000e+00> : vector<1xf32>
      %93 = vector.multi_reduction <add>, %92, %cst_49 [0] : vector<4x1xf32> to vector<1xf32>
      %94 = vector.shape_cast %93 : vector<1xf32> to vector<1x1xf32>
      %95 = vector.broadcast %65 : f32 to vector<1x1xf32>
      %96 = arith.mulf %94, %95 : vector<1x1xf32>
      %97 = vector.extract_strided_slice %85 {offsets = [0, 0], sizes = [1, 128], strides = [1, 1]} : vector<4x128xf32> to vector<1x128xf32>
      %98 = vector.extract_strided_slice %85 {offsets = [1, 0], sizes = [1, 128], strides = [1, 1]} : vector<4x128xf32> to vector<1x128xf32>
      %99 = vector.extract_strided_slice %85 {offsets = [2, 0], sizes = [1, 128], strides = [1, 1]} : vector<4x128xf32> to vector<1x128xf32>
      %100 = vector.extract_strided_slice %85 {offsets = [3, 0], sizes = [1, 128], strides = [1, 1]} : vector<4x128xf32> to vector<1x128xf32>
      %cst_50 = arith.constant 5.000000e-01 : f32
      %101 = vector.broadcast %cst_50 : f32 to vector<1x128xf32>
      %102 = arith.mulf %101, %99 : vector<1x128xf32>
      %103 = arith.subf %97, %102 : vector<1x128xf32>
      %cst_51 = arith.constant 5.000000e-01 : f32
      %104 = vector.broadcast %cst_51 : f32 to vector<1x128xf32>
      %105 = arith.mulf %104, %100 : vector<1x128xf32>
      %106 = arith.subf %98, %105 : vector<1x128xf32>
      %cst_52 = arith.constant 5.000000e-01 : f32
      %107 = vector.broadcast %cst_52 : f32 to vector<1x128xf32>
      %108 = arith.mulf %107, %99 : vector<1x128xf32>
      %109 = arith.addf %97, %108 : vector<1x128xf32>
      %cst_53 = arith.constant 5.000000e-01 : f32
      %110 = vector.broadcast %cst_53 : f32 to vector<1x128xf32>
      %111 = arith.mulf %110, %100 : vector<1x128xf32>
      %112 = arith.addf %98, %111 : vector<1x128xf32>
      %113 = vector.extract_strided_slice %86 {offsets = [0, 0], sizes = [1, 128], strides = [1, 1]} : vector<4x128xf32> to vector<1x128xf32>
      %114 = vector.extract_strided_slice %86 {offsets = [1, 0], sizes = [1, 128], strides = [1, 1]} : vector<4x128xf32> to vector<1x128xf32>
      %115 = vector.extract_strided_slice %86 {offsets = [2, 0], sizes = [1, 128], strides = [1, 1]} : vector<4x128xf32> to vector<1x128xf32>
      %116 = vector.extract_strided_slice %86 {offsets = [3, 0], sizes = [1, 128], strides = [1, 1]} : vector<4x128xf32> to vector<1x128xf32>
      %cst_54 = arith.constant 5.000000e-01 : f32
      %117 = vector.broadcast %cst_54 : f32 to vector<1x128xf32>
      %118 = arith.mulf %117, %115 : vector<1x128xf32>
      %119 = arith.subf %113, %118 : vector<1x128xf32>
      %cst_55 = arith.constant 5.000000e-01 : f32
      %120 = vector.broadcast %cst_55 : f32 to vector<1x128xf32>
      %121 = arith.mulf %120, %116 : vector<1x128xf32>
      %122 = arith.subf %114, %121 : vector<1x128xf32>
      %cst_56 = arith.constant 5.000000e-01 : f32
      %123 = vector.broadcast %cst_56 : f32 to vector<1x128xf32>
      %124 = arith.mulf %123, %115 : vector<1x128xf32>
      %125 = arith.addf %113, %124 : vector<1x128xf32>
      %cst_57 = arith.constant 5.000000e-01 : f32
      %126 = vector.broadcast %cst_57 : f32 to vector<1x128xf32>
      %127 = arith.mulf %126, %116 : vector<1x128xf32>
      %128 = arith.addf %114, %127 : vector<1x128xf32>
      %129 = arith.subf %109, %103 : vector<1x128xf32>
      %130 = arith.subf %112, %106 : vector<1x128xf32>
      %131 = arith.mulf %129, %130 : vector<1x128xf32>
      %132 = arith.subf %125, %119 : vector<1x128xf32>
      %133 = arith.subf %128, %122 : vector<1x128xf32>
      %134 = arith.mulf %132, %133 : vector<1x128xf32>
      %135 = arith.minimumf %109, %125 : vector<1x128xf32>
      %136 = arith.maximumf %103, %119 : vector<1x128xf32>
      %137 = arith.subf %135, %136 : vector<1x128xf32>
      %cst_58 = arith.constant 0.000000e+00 : f32
      %138 = vector.broadcast %cst_58 : f32 to vector<1x128xf32>
      %139 = arith.maximumf %137, %138 : vector<1x128xf32>
      %140 = arith.minimumf %112, %128 : vector<1x128xf32>
      %141 = arith.maximumf %106, %122 : vector<1x128xf32>
      %142 = arith.subf %140, %141 : vector<1x128xf32>
      %cst_59 = arith.constant 0.000000e+00 : f32
      %143 = vector.broadcast %cst_59 : f32 to vector<1x128xf32>
      %144 = arith.maximumf %142, %143 : vector<1x128xf32>
      %145 = arith.mulf %139, %144 : vector<1x128xf32>
      %146 = arith.addf %131, %134 : vector<1x128xf32>
      %147 = arith.subf %146, %145 : vector<1x128xf32>
      %148 = arith.maximumf %109, %125 : vector<1x128xf32>
      %149 = arith.minimumf %103, %119 : vector<1x128xf32>
      %150 = arith.subf %148, %149 : vector<1x128xf32>
      %cst_60 = arith.constant 0.000000e+00 : f32
      %151 = vector.broadcast %cst_60 : f32 to vector<1x128xf32>
      %152 = arith.maximumf %150, %151 : vector<1x128xf32>
      %153 = arith.maximumf %112, %128 : vector<1x128xf32>
      %154 = arith.minimumf %106, %122 : vector<1x128xf32>
      %155 = arith.subf %153, %154 : vector<1x128xf32>
      %cst_61 = arith.constant 0.000000e+00 : f32
      %156 = vector.broadcast %cst_61 : f32 to vector<1x128xf32>
      %157 = arith.maximumf %155, %156 : vector<1x128xf32>
      %158 = arith.mulf %152, %157 : vector<1x128xf32>
      %cst_62 = arith.constant 1.000000e+00 : f32
      %159 = vector.broadcast %cst_62 : f32 to vector<1x128xf32>
      %160 = arith.select %82, %147, %159 : vector<1x128xi1>, vector<1x128xf32>
      %cst_63 = arith.constant 1.000000e+00 : f32
      %161 = vector.broadcast %cst_63 : f32 to vector<1x128xf32>
      %162 = arith.select %82, %158, %161 : vector<1x128xi1>, vector<1x128xf32>
      %163 = arith.divf %145, %160 : vector<1x128xf32>
      %164 = arith.subf %162, %160 : vector<1x128xf32>
      %165 = arith.divf %164, %162 : vector<1x128xf32>
      %166 = arith.subf %163, %165 : vector<1x128xf32>
      %cst_64 = arith.constant 1.000000e+00 : f32
      %167 = vector.broadcast %cst_64 : f32 to vector<1x128xf32>
      %168 = arith.subf %167, %166 : vector<1x128xf32>
      %169 = arith.mulf %168, %84 : vector<1x128xf32>
      %cst_65 = arith.constant dense<0.000000e+00> : vector<1xf32>
      %170 = vector.multi_reduction <add>, %169, %cst_65 [1] : vector<1x128xf32> to vector<1xf32>
      %171 = vector.shape_cast %170 : vector<1xf32> to vector<1x1xf32>
      %172 = vector.broadcast %65 : f32 to vector<1x1xf32>
      %173 = arith.mulf %171, %172 : vector<1x1xf32>
      %174 = tpu.iota {dimensions = array<i32: 0>} : vector<8x128xi32>
      %175 = tpu.iota {dimensions = array<i32: 1>} : vector<8x128xi32>
      %c0_i32_66 = arith.constant 0 : i32
      %176 = vector.broadcast %c0_i32_66 : i32 to vector<8x128xi32>
      %177 = arith.cmpi eq, %174, %176 : vector<8x128xi32>
      %c0_i32_67 = arith.constant 0 : i32
      %178 = vector.broadcast %c0_i32_67 : i32 to vector<8x128xi32>
      %179 = arith.cmpi eq, %175, %178 : vector<8x128xi32>
      %180 = arith.andi %177, %179 : vector<8x128xi1>
      %cst_68 = arith.constant 1.000000e+00 : f32
      %cst_69 = arith.constant 0.000000e+00 : f32
      %181 = vector.broadcast %cst_68 : f32 to vector<8x128xf32>
      %182 = vector.broadcast %cst_69 : f32 to vector<8x128xf32>
      %183 = arith.select %180, %181, %182 : vector<8x128xi1>, vector<8x128xf32>
      %184 = vector.broadcast %69 : vector<1x1xf32> to vector<8x128xf32>
      %185 = arith.mulf %183, %184 : vector<8x128xf32>
      %c1_i32 = arith.constant 1 : i32
      %186 = vector.broadcast %c1_i32 : i32 to vector<8x128xi32>
      %187 = arith.cmpi eq, %175, %186 : vector<8x128xi32>
      %188 = arith.andi %177, %187 : vector<8x128xi1>
      %cst_70 = arith.constant 1.000000e+00 : f32
      %cst_71 = arith.constant 0.000000e+00 : f32
      %189 = vector.broadcast %cst_70 : f32 to vector<8x128xf32>
      %190 = vector.broadcast %cst_71 : f32 to vector<8x128xf32>
      %191 = arith.select %188, %189, %190 : vector<8x128xi1>, vector<8x128xf32>
      %192 = vector.broadcast %77 : vector<1x1xf32> to vector<8x128xf32>
      %193 = arith.mulf %191, %192 : vector<8x128xf32>
      %194 = arith.addf %185, %193 : vector<8x128xf32>
      %c2_i32 = arith.constant 2 : i32
      %195 = vector.broadcast %c2_i32 : i32 to vector<8x128xi32>
      %196 = arith.cmpi eq, %175, %195 : vector<8x128xi32>
      %197 = arith.andi %177, %196 : vector<8x128xi1>
      %cst_72 = arith.constant 1.000000e+00 : f32
      %cst_73 = arith.constant 0.000000e+00 : f32
      %198 = vector.broadcast %cst_72 : f32 to vector<8x128xf32>
      %199 = vector.broadcast %cst_73 : f32 to vector<8x128xf32>
      %200 = arith.select %197, %198, %199 : vector<8x128xi1>, vector<8x128xf32>
      %201 = vector.broadcast %96 : vector<1x1xf32> to vector<8x128xf32>
      %202 = arith.mulf %200, %201 : vector<8x128xf32>
      %203 = arith.addf %194, %202 : vector<8x128xf32>
      %c3_i32 = arith.constant 3 : i32
      %204 = vector.broadcast %c3_i32 : i32 to vector<8x128xi32>
      %205 = arith.cmpi eq, %175, %204 : vector<8x128xi32>
      %206 = arith.andi %177, %205 : vector<8x128xi1>
      %cst_74 = arith.constant 1.000000e+00 : f32
      %cst_75 = arith.constant 0.000000e+00 : f32
      %207 = vector.broadcast %cst_74 : f32 to vector<8x128xf32>
      %208 = vector.broadcast %cst_75 : f32 to vector<8x128xf32>
      %209 = arith.select %206, %207, %208 : vector<8x128xi1>, vector<8x128xf32>
      %210 = vector.broadcast %173 : vector<1x1xf32> to vector<8x128xf32>
      %211 = arith.mulf %209, %210 : vector<8x128xf32>
      %212 = arith.addf %203, %211 : vector<8x128xf32>
      %c0_76 = arith.constant 0 : index
      %c0_77 = arith.constant 0 : index
      %c0_78 = arith.constant 0 : index
      %213 = vector.load %arg8[%c0_76, %c0_77, %c0_78] : memref<1x8x128xf32, #tpu.memory_space<vmem>>, vector<1x8x128xf32>
      %214 = vector.shape_cast %213 : vector<1x8x128xf32> to vector<8x128xf32>
      %215 = vector.shape_cast %212 : vector<8x128xf32> to vector<1x8x128xf32>
      tpu.vector_store %arg8[%c0_76, %c0_77, %c0_78], %215 {strides = array<i32>} : memref<1x8x128xf32, #tpu.memory_space<vmem>>, vector<1x8x128xf32>,
    } else {
    }
    return
  }
  func.func @transform_0(%arg0: i32, %arg1: i32) -> (i32, i32, i32, i32) {
    %c0_i32 = arith.constant 0 : i32
    %c0_i32_0 = arith.constant 0 : i32
    %c0_i32_1 = arith.constant 0 : i32
    return %arg0, %c0_i32, %arg1, %c0_i32_0 : i32, i32, i32, i32
  }
  func.func @transform_1(%arg0: i32, %arg1: i32) -> (i32, i32, i32, i32) {
    %c0_i32 = arith.constant 0 : i32
    %c0_i32_0 = arith.constant 0 : i32
    %c0_i32_1 = arith.constant 0 : i32
    return %arg0, %c0_i32, %arg1, %c0_i32_0 : i32, i32, i32, i32
  }
  func.func @transform_2(%arg0: i32, %arg1: i32) -> (i32, i32) {
    %c0_i32 = arith.constant 0 : i32
    %c0_i32_0 = arith.constant 0 : i32
    %c0_i32_1 = arith.constant 0 : i32
    return %c0_i32, %c0_i32_0 : i32, i32
  }
  func.func @transform_3(%arg0: i32, %arg1: i32) -> (i32, i32, i32) {
    %c0_i32 = arith.constant 0 : i32
    %c0_i32_0 = arith.constant 0 : i32
    %c0_i32_1 = arith.constant 0 : i32
    return %arg0, %c0_i32, %c0_i32_0 : i32, i32, i32
  }
  func.func @transform_4(%arg0: i32, %arg1: i32) -> i32 {
    %c0_i32 = arith.constant 0 : i32
    %c0_i32_0 = arith.constant 0 : i32
    return %c0_i32 : i32
  }
  func.func @transform_5(%arg0: i32, %arg1: i32) -> i32 {
    %c0_i32 = arith.constant 0 : i32
    %c0_i32_0 = arith.constant 0 : i32
    return %c0_i32 : i32
  }
  func.func @transform_6(%arg0: i32, %arg1: i32) -> (i32, i32, i32) {
    %c0_i32 = arith.constant 0 : i32
    %c0_i32_0 = arith.constant 0 : i32
    %c0_i32_1 = arith.constant 0 : i32
    return %arg0, %c0_i32, %c0_i32_0 : i32, i32, i32
  }
}

</mosaic_0001>

<bundles_post_ra>
// kernel: tpu_custom_call.1
= control target key start
LH: loop header
LB: loop body
LE: loop exit
PB: predicated region body
PF: predicated region fallthrough
CT: control target
= control target key end

     0   :  { %s1272_s0 = inlined_call_operand.vmem [shape: f32[3,2,8,5], index: 0, kind: input, shape index: {}]   ;;  %s1273_s1 = inlined_call_operand.vmem [shape: s32[3,2,8,1], index: 1, kind: input, shape index: {}]   ;;  %s1274_s2 = inlined_call_operand.vmem [shape: f32[2,1], index: 2, kind: input, shape index: {}]   ;;  %s1275_s3 = inlined_call_operand.vmem [shape: f32[3,8,128], index: 3, kind: input, shape index: {}]   ;;  %s1276_s4 = inlined_call_operand.<no memory space> [shape: s32[1], index: 4, kind: input, shape index: {}]   ;;  %s1277_s5 = inlined_call_operand.vmem [shape: f32[2], index: 5, kind: input, shape index: {}]   ;;  %s1278_s6 = inlined_call_operand.hbm [shape: f32[3,8,128], index: 6, kind: output, shape index: {}]  }
   0x1   :  { %11 = sst [smem:[#allocation5]] %s1276_s4 }
   0x2   :  { %12 = vsyncpa [#allocation8], 0 }
   0x3   :  { %13 = vsyncpa [#allocation7], 0 }
   0x4   :  { %15 = vsyncpa [#allocation7 + $0x1], 0  ;;  %s1020_s23 = smov 0   ;;  %s1022_s24 = smov 0  }
   0x5   :  { %s1024_s25 = smov 0   ;;  %s1026_s26 = smov 0  }
   0x6   :  { %s1028_s27 = smov 0   ;;  %s1030_s28 = smov 0  }
   0x7 LB: > { %s767_s4 = sadd.s32 4294967295, %s974_s28   ;;  %s768_s29 = sadd.s32 4294967294, %s974_s28   ;;  %s974_s28 = sphi %s1030_s28, %s21_s28   ;;  %s970_s27 = sphi %s1028_s27, %s1289_s27   ;;  %s966_s26 = sphi %s1026_s26, %s1288_s26   ;;  %s962_s25 = sphi %s1024_s25, %s1287_s25   ;;  %s958_s24 = sphi %s1022_s24, %s1286_s24   ;;  %s954_s23 = sphi %s1020_s23, %s1285_s23  }
   0x8   : > { %s33_s30 = sadd.s32 1, %s970_s27  ;;  %s185_s7 = sadd.s32 1, %s962_s25 }
   0x9   : > { %p35_p0 = scmp.ge.s32.totalorder %s33_s30, 3  ;;  %p195_p1 = scmp.ne.s32.totalorder %s962_s25, %s958_s24 }
   0xa   : > { %p196_p2 = scmp.eq.s32.totalorder %s767_s4, 2  ;;  %p201_p3 = scmp.ne.s32.totalorder %s958_s24, %s954_s23 }
   0xb   : > { %s1291_s30 = smov (%p35_p0, %s33_s30), 0  ;;  %p202_p5 = scmp.eq.s32.totalorder %s768_s29, 2 }
   0xc   : > { %p1060_p4 = por %p196_p2, %p195_p1  ;;  %s182_s9 = ssub.s32 %s970_s27, %s1291_s30 }
   0xd   : > { %p769_p6 = scmp.ge.s32.totalorder %s974_s28, 1  ;;  %p183_p7 = scmp.eq.s32.totalorder %s182_s9, 0 }
   0xe   : > { %p1067_p8 = por %p202_p5, %p201_p3  ;;  %p209_p9 = scmp.lt.s32.totalorder %s974_s28, 4 }
   0xf   : > { %s1073_s11 = scalar_select %p183_p7, %s962_s25, %s185_s7  }
  0x10   : > { %p1075_p10 = pnand %p769_p6, %p209_p9  ;;  %p1079_p11 = scmp.eq.s32.totalorder %s767_s4, 0 }
  0x11   : > { %s228_s16 = sshll.u32 %s1277_s5, 4  ;;  %s229_s16 = int_to_ptr.vmem [resolvable:$true] %s228_s16 }
  0x12   : > { %p796_p12 = pneg %p1075_p10  ;;  %s877_s17 = scalar_lea.vmem %s229_s16, 16 }
  0x13   : > { %p878_p0 = scmp.ne.s32.totalorder %s229_s16, %s877_s17  ;;  %p885_p5 = scmp.lt.s32.totalorder %s229_s16, %s229_s16 }
  0x14   : > { %p797_p13 = pnand %p1079_p11, %p796_p12  ;;  %p886_p6 = scmp.lt.s32.totalorder %s877_s17, %s877_s17 }
  0x16   : > { %p879_p1 = pneg %p797_p13  ;;  %p887_p7 = por %p886_p6, %p885_p5 }
  0x18   : > { %p880_p2 = pnand %p879_p1, %p878_p0 }
  0x1a   : > { %p881_p3 = pneg %p880_p2 }
  0x1c   : > { %p888_p9 = pnand %p887_p7, %p881_p3 }
  0x1e   : > { %891 = shalt.err (!%p888_p9)
}
  0x1f   : > { %s976_s18 = smov [#allocation6]   ;;  %270 = sbr.rel (%p1075_p10) target bundleno = 802 (0x322), region = 44 }
  0x20   : > { %799 = dma.vmem_to_smem (!%p797_p13), %s229_s16, 16, %s976_s18, [#allocation8]  }
  0x26   : > { %945 = dma.done.wait (%p1079_p11), [#allocation8], 16  }
  0x27   : > { %947 = vsyncadd (%p1079_p11), [#allocation8], 4294967280 }
  0x28   : > { %276 = sfence }
  0x29   : > { %p316_p12 = scmp.lt.s32.totalorder %s966_s26, 2  ;;  %v350_v0 = vlaneseq  ;;  %vm355_vm1 = vcmask 39936   ;;  %v977_v8 = vmov 4   ;;  %v978_v9 = vmov 0   ;;  %s1142_s12 = sld [smem:[#allocation6 + $0x1]] }
  0x2a   : > { %860 = vset.pattern.permute.xlu1 %v977_v8  ;;  %861 = vset.pattern.permute.xlu0 %v978_v9  ;;  %vm474_vm2 = vcmask 39968   ;;  %v979_v13 = vmov 0.0   ;;  %vm491_vm5 = vcmask 1041409   ;;  %vm426_vm9 = vcmask 7168   ;;  %s503_s17 = sld [smem:[#allocation5]]  ;;  %s980_s18 = smov 124  }
  0x2b   : > { %s1098_s19 = scalar_select %p316_p12, %s966_s26, 2  ;;  %v1101_v1 = vand.u32 127, %v350_v0  ;;  %vm343_vm12 = vcmask 1024   ;;  %vm340_vm13 = vcmask 0   ;;  %vm592_vm14 = vcmask 1040384  }
  0x2c   : > { %344 = vst.msk [vmem:[#allocation4] sm:$0x3] %vm343_vm12, %v979_v13  ;;  %vm531_vm15 = vcmask 1043456   ;;  %s1199_s21 = sld [smem:[#allocation6]]  ;;  %s313_s22 = sand.u32 1, %s958_s24  }
  0x2d   : > { %s788_s20 = sshll.u32 %s1098_s19, 4  ;;  %vm352_vm0 = vcmp.lt.s32.totalorder %v1101_v1, 4  ;;  %s779_s13 = sshll.u32 %s1098_s19, 3  ;;  %341 = vst.msk [vmem:[#allocation2] sm:$0x1] %vm340_vm13, %v979_v13 }
  0x2e   : > { %s323_s4 = scalar_lea.vmem %s1272_s0, %s788_s20  ;;  %s331_s9 = scalar_lea.vmem %s1273_s1, %s788_s20  ;;  %342 = vst.msk [vmem:[#allocation3] sm:$0x1] %vm340_vm13, %v979_v13 }
  0x2f   : > { %v345_v2 = vld [vmem:[%s323_s4] sm:$0xff]  ;;  %v1108_v3 = vld [vmem:[%s323_s4 + $0x8] sm:$0xff]  ;;  %s335_s16 = scalar_lea.vmem %s1275_s3, %s779_s13  ;;  %v410_v51 = vstv %s1142_s12  ;;  %s774_s4 = sshll.u32 %s313_s22, 3 }
  0x30   : > { %v353_v4 = vsel %vm352_vm0, %v345_v2, -inf  ;;  %v354_v5 = vsel %vm352_vm0, %v1108_v3, -inf  ;;  %v1116_v10 = vld [vmem:[%s331_s9] sm:$0xff]  ;;  %v1129_v24 = vld [vmem:[%s331_s9 + $0x8] sm:$0xff]  ;;  %s785_s29 = sshll.u32 %s966_s26, 7  ;;  %s315_s7 = scalar_lea.vmem [#allocation9], %s774_s4 }
  0x31   : > { %v356_v6 = vsel %vm355_vm1, %v353_v4, -inf  ;;  %v359_v7 = vsel %vm355_vm1, %v354_v5, -inf  ;;  %v1148_v50 = vld [vmem:[%s335_s16] sm:$0xff]  ;;  %vm408_vm8 = vcmp.eq.s32.totalorder %v1116_v10, 4  ;;  %vm409_vm11 = vcmp.eq.s32.totalorder %v1129_v24, 4  ;;  %s652_s9 = sshll.u32 %s315_s7, 4  ;;  %s1225_s14 = scalar_lea.hbm %s1278_s6, %s785_s29  ;;  %s1227_s9 = int_to_ptr.vmem [resolvable:$true] %s652_s9 }
  0x32   : > { %357 = vmax.xlane.f32.xlu0 %v356_v6  ;;  %v544_v52 = vmul.f32 0.5, %v1148_v50  ;;  %v1153_v54 = vsel %vm408_vm8, %v410_v51, 1.0  ;;  %s639_s15 = scalar_lea.sflag [#allocation7], %s313_s22  ;;  %s892_s16 = scalar_lea.vmem %s1227_s9, 128 }
  0x33   : > { %v448_v57 = vsel %vm426_vm9, %v1153_v54, 0.0  ;;  %p893_p10 = scmp.ne.s32.totalorder %s1227_s9, %s892_s16  ;;  %s981_s26 = smov [#allocation9]  }
  0x34   : > { %v546_v53 = vrot.slane %v544_v52, 2  ;;  %v449_v63 = vrot.slane %v448_v57, 4 }
  0x35   : > { %p894_p11 = pnand %p893_p10, %p1060_p4 }
  0x36   : > { %360 = vmax.xlane.f32.xlu0 %v359_v7  ;;  %v548_v55 = vsub.f32 %v1148_v50, %v546_v53  ;;  %v549_v56 = vadd.f32 %v546_v53, %v1148_v50 }
  0x37   : > { %p895_p13 = pneg %p894_p11 }
  0x38   : > { %v556_v58 = vrot.slane %v549_v56, 4  ;;  %v560_v59 = vrot.slane %v548_v55, 4  ;;  %v550_v60 = vsub.f32 %v549_v56, %v548_v55 }
  0x3a   : > { %v558_v61 = vmin.f32 %v549_v56, %v556_v58  ;;  %v562_v62 = vmax.f32 %v548_v55, %v560_v59  ;;  %v574_v4 = vmax.f32 %v549_v56, %v556_v58  ;;  %v575_v5 = vmin.f32 %v548_v55, %v560_v59  ;;  %v447_v56 = vld [vmem:[#allocation3] sm:$0x1] }
  0x3c   : > { %v576_v8 = vsub.f32 %v574_v4, %v575_v5  ;;  %v526_v4 = vrot.slane %v1148_v50, 4 }
  0x3e   : > { %v528_v5 = vsub.f32 %v1148_v50, %v526_v4 }
  0x4c   : > { %393 = vperm.xlu0 %861, %v1116_v10  }
  0xbf   : > { %v358_v11 = vpop.xlane.xlu0 %357 }
  0xc0   : > { %vm467_vm3 = vcmp.ge.f32.partialorder %v358_v11, %v345_v2  ;;  %v1119_v12 = vmax.f32 %v358_v11, %v345_v2 }
  0xc1   : > { %v781_v14 = vsel %vm467_vm3, 1.0, %v979_v13  ;;  %vm600_vm3 = vcmp.eq.s32.totalorder %v1101_v1, 0 }
  0xc2   : > { %v475_v15 = vsel %vm474_vm2, %v781_v14, 0.0  ;;  %366 = vperm.xlu1 %860, %v1119_v12   ;;  %v577_v14 = vmax.f32 %v576_v8, 0.0 }
  0xc3   : > { %v476_v16 = vrot.slane %v475_v15, 4  ;;  %v361_v17 = vpop.xlane.xlu0 %360 }
  0xc4   : > { %v1124_v18 = vmax.f32 %v361_v17, %v1108_v3  ;;  %vm468_vm4 = vcmp.ge.f32.partialorder %v361_v17, %v1108_v3  ;;  %v579_v17 = vrot.slane %v577_v14, 1 }
  0xc5   : > { %v477_v19 = vadd.f32 %v476_v16, %v475_v15  ;;  %v782_v20 = vsel %vm468_vm4, 1.0, %v979_v13  ;;  %vm613_vm4 = vcmp.eq.s32.totalorder %v1101_v1, 1 }
  0xc6   : > { %v482_v21 = vsel %vm474_vm2, %v782_v20, 0.0  ;;  %371 = vperm.xlu1 %860, %v1124_v18   ;;  %v521_v20 = vstv %s503_s17  ;;  %s896_s17 = sshll.u32 %s981_s26, 4  ;;  %s897_s17 = int_to_ptr.vmem [resolvable:$false] %s896_s17 }
  0xc7   : > { %v478_v22 = vrot.slane %v477_v19, 2  ;;  %v483_v23 = vrot.slane %v482_v21, 4  ;;  %vm1160_vm10 = vcmp.lt.s32.totalorder %v1101_v1, %v521_v20  ;;  %p899_p0 = scmp.lt.s32.totalorder %s1227_s9, %s897_s17 }
  0xc9   : > { %v479_v25 = vadd.f32 %v478_v22, %v477_v19  ;;  %v484_v26 = vadd.f32 %v483_v23, %v482_v21  ;;  %v581_v22 = vmul.f32 %v579_v17, %v577_v14 }
  0xca   : > { %862 = vset.pattern.permute.xlu1 %v978_v9  ;;  %v450_v9 = vadd.f32 %v449_v63, %v448_v57 }
  0xcb   : > { %v485_v27 = vrot.slane %v484_v26, 2  ;;  %396 = vperm.xlu1 %862, %v1129_v24   ;;  %v480_v29 = vrot.slane %v479_v25, 1  ;;  %v394_v34 = vpop.permute.xlu0 %393 }
  0xcc   : > { %vm398_vm6 = vcmp.eq.s32.totalorder %v1101_v1, %v394_v34  ;;  %v451_v19 = vrot.slane %v450_v9, 2 }
  0xcd   : > { %v486_v28 = vadd.f32 %v485_v27, %v484_v26  ;;  %v481_v31 = vadd.f32 %v480_v29, %v479_v25  ;;  %v400_v35 = vsel %vm398_vm6, %v345_v2, 0.0  ;;  %v583_v26 = vsel %vm1160_vm10, %v581_v22, 1.0 }
  0xce   : > { %v402_v36 = vsel %vm355_vm1, %v400_v35, 0.0  ;;  %v452_v27 = vadd.f32 %v451_v19, %v450_v9 }
  0xcf   : > { %v487_v30 = vrot.slane %v486_v28, 1  ;;  %403 = vadd.xlane.f32.xlu0 %v402_v36 }
  0xd1   : > { %v488_v32 = vadd.f32 %v487_v30, %v486_v28  ;;  %v1169_v28 = vsel %vm409_vm11, %v410_v51, 1.0 }
  0xd2   : > { %v455_v30 = vsel %vm426_vm9, %v1169_v28, 0.0 }
  0xd3   : > { %v1132_v33 = vsel %vm491_vm5, %v488_v32, %v481_v31  ;;  %v456_v31 = vrot.slane %v455_v30, 4  ;;  %v453_v32 = vrot.slane %v452_v27, 1  ;;  %vm623_vm5 = vcmp.eq.s32.totalorder %v1101_v1, 2 }
  0xd5   : > { %v457_v34 = vadd.f32 %v456_v31, %v455_v30  ;;  %v454_v36 = vadd.f32 %v453_v32, %v452_v27 }
  0xd7   : > { %v458_v35 = vrot.slane %v457_v34, 2 }
 0x141   : > { %v367_v37 = vpop.permute.xlu1 %366 }
 0x142   : > { %v374_v38 = vsub.f32 %v345_v2, %v367_v37  ;;  %v552_v2 = vrot.slane %v550_v60, 1  ;;  %v459_v37 = vadd.f32 %v458_v35, %v457_v34  ;;  %v425_v35 = vld [vmem:[#allocation2] sm:$0x1] }
 0x144   : > { %v376_v39 = vmul.f32 1.442695, %v374_v38  ;;  %v554_v6 = vmul.f32 %v552_v2, %v550_v60 }
 0x145   : > { %v372_v40 = vpop.permute.xlu1 %371 }
 0x146   : > { %863 = vpow2.f32 %v376_v39  ;;  %v375_v41 = vsub.f32 %v1108_v3, %v372_v40  ;;  %v570_v11 = vrot.slane %v554_v6, 4  ;;  %v460_v40 = vrot.slane %v459_v37, 1 }
 0x148   : > { %v378_v42 = vmul.f32 1.442695, %v375_v41  ;;  %v572_v16 = vadd.f32 %v570_v11, %v554_v6  ;;  %v529_v6 = vand.u32 2147483647, %v528_v5 }
 0x14a   : > { %865 = vpow2.f32 %v378_v42  ;;  %v397_v43 = vpop.permute.xlu1 %396 }
 0x14b   : > { %vm399_vm7 = vcmp.eq.s32.totalorder %v1101_v1, %v397_v43 }
 0x14c   : > { %v401_v47 = vsel %vm399_vm7, %v1108_v3, 0.0  ;;  %v563_v3 = vsub.f32 %v558_v61, %v562_v62  ;;  %v783_v61 = vsel %vm1160_vm10, 1.0, %v979_v13 }
 0x14d   : > { %v405_v49 = vsel %vm355_vm1, %v401_v47, 0.0 }
 0x14e   : > { %v564_v7 = vmax.f32 %v563_v3, 0.0 }
 0x150   : > { %v864_v44 = vpop.eup %863  ;;  %v566_v10 = vrot.slane %v564_v7, 1 }
 0x151   : > { %v380_v45 = vsel %vm355_vm1, %v864_v44, 0.0  ;;  %v462_v44 = vsel %vm426_vm9, %v454_v36, 0.0 }
 0x152   : > { %381 = vadd.xlane.f32.xlu1 %v380_v45  ;;  %v568_v15 = vmul.f32 %v566_v10, %v564_v7  ;;  %v461_v45 = vadd.f32 %v460_v40, %v459_v37  ;;  %v530_v7 = vmul.f32 %v783_v61, %v529_v6  ;;  %v598_v40 = vshrl.u32 %v350_v0, 7 }
 0x154   : > { %v866_v46 = vpop.eup %865  ;;  %v573_v21 = vsub.f32 %v572_v16, %v568_v15  ;;  %v532_v8 = vsel %vm531_vm15, %v530_v7, 0.0  ;;  %v473_v16 = vld [vmem:[#allocation4] sm:$0x3]  ;;  %vm599_vm0 = vcmp.eq.s32.totalorder %v598_v40, 0 }
 0x155   : > { %v383_v48 = vsel %vm355_vm1, %v866_v46, 0.0  ;;  %vm628_vm1 = vcmp.eq.s32.totalorder %v1101_v1, 3  ;;  %vm601_vm6 = vmand %vm599_vm0, %vm600_vm3 }
 0x156   : > { %384 = vadd.xlane.f32.xlu1 %v383_v48  ;;  %v582_v25 = vsel %vm1160_vm10, %v573_v21, 1.0  ;;  %vm629_vm2 = vmand %vm599_vm0, %vm628_vm1  ;;  %v602_v7 = vsel %vm601_vm6, 1.0, %v979_v13 }
 0x157   : > { %867 = vrcp.f32 %v582_v25  ;;  %v586_v38 = vsub.f32 %v583_v26, %v582_v25  ;;  %v630_v0 = vsel %vm629_vm2, 1.0, %v979_v13  ;;  %vm614_vm7 = vmand %vm599_vm0, %vm613_vm4 }
 0x158   : > { %869 = vrcp.f32 %v583_v26  ;;  %vm624_vm8 = vmand %vm599_vm0, %vm623_vm5 }
 0x15a   : > { %406 = vadd.xlane.f32.xlu1 %v405_v49  ;;  %v463_v49 = vsel %vm426_vm9, %v461_v45, 0.0 }
 0x15b   : > { %v464_v53 = vadd.f32 %v463_v49, %v462_v44  ;;  %v542_v44 = vstv %s1199_s21 }
 0x15c   : > { %v404_v48 = vpop.xlane.xlu0 %403 }
 0x15d   : > { %v465_v60 = vadd.f32 %v464_v53, %v447_v56 }
 0x15f   : > { %466 = vst.msk [vmem:[#allocation3] sm:$0x1] %vm340_vm13, %v465_v60 }
 0x161   : > { %v868_v39 = vpop.eup %867 }
 0x162   : > { %v870_v41 = vpop.eup %869  ;;  %v585_v42 = vmul.f32 %v868_v39, %v568_v15 }
 0x163   : > { %v588_v46 = vmul.f32 %v870_v41, %v586_v38 }
 0x165   : > { %v589_v51 = vsub.f32 %v585_v42, %v588_v46 }
 0x166   : > { %v505_v30 = vld [vmem:[#allocation3] sm:$0x1] }
 0x167   : > { %v590_v57 = vsub.f32 1.0, %v589_v51 }
 0x169   : > { %v591_v63 = vmul.f32 %v783_v61, %v590_v57 }
 0x1df   : > { %v382_v29 = vpop.xlane.xlu1 %381 }
 0x1e0   : > { %871 = vlog2.f32 %v382_v29 }
 0x1e3   : > { %v385_v24 = vpop.xlane.xlu1 %384 }
 0x1e4   : > { %873 = vlog2.f32 %v385_v24 }
 0x1e5   : > { %875 = vrcp.f32 %v505_v30 }
 0x1e7   : > { %v407_v62 = vpop.xlane.xlu1 %406 }
 0x1ea   : > { %v872_v43 = vpop.eup %871 }
 0x1eb   : > { %v387_v47 = vmul.f32 0.6931472, %v872_v43 }
 0x1ed   : > { %v390_v52 = vadd.f32 %v387_v47, %v1119_v12  ;;  %v593_v12 = vsel %vm592_vm14, %v591_v63, 0.0 }
 0x1ee   : > { %v874_v55 = vpop.eup %873  ;;  %594 = vadd.xlane.f32.xlu0 %v593_v12 }
 0x1ef   : > { %v389_v58 = vmul.f32 0.6931472, %v874_v55  ;;  %v413_v59 = vsub.f32 %v390_v52, %v404_v48  ;;  %v876_v47 = vpop.eup %875  ;;  %v606_v48 = vsub.s32 0, %v598_v40 }
 0x1f1   : > { %417 = vrot.lane.b32.xlu1 %v413_v59, %s980_s18  ;;  %v391_v2 = vadd.f32 %v389_v58, %v1124_v18 }
 0x1f3   : > { %v414_v3 = vsub.f32 %v391_v2, %v407_v62 }
 0x1f5   : > { %419 = vrot.lane.b32.xlu1 %v414_v3, %s980_s18 }
 0x1f9   : > { %493 = vrot.lane.b32.xlu1 %v1132_v33, %s980_s18  ;;  %s898_s18 = scalar_lea.vmem %s897_s17, 256 }
 0x1fa   : > { %p900_p1 = scmp.lt.s32.totalorder %s898_s18, %s892_s16 }
 0x1fc   : > { %p901_p2 = por %p900_p1, %p899_p0 }
 0x1fe   : > { %p902_p3 = pnand %p901_p2, %p895_p13 }
 0x21d   : > { %533 = vadd.xlane.f32.xlu1 %v532_v8  ;;  %v615_v8 = vsel %vm614_vm7, 1.0, %v979_v13 }
 0x263   : > { %v418_v9 = vpop.permute.xlu1 %417 }
 0x264   : > { %v423_v18 = vmul.f32 %v418_v9, %v1153_v54 }
 0x266   : > { %v427_v10 = vsel %vm426_vm9, %v423_v18, 0.0  ;;  %v625_v18 = vsel %vm624_vm8, 1.0, %v979_v13 }
 0x267   : > { %v428_v11 = vrot.slane %v427_v10, 4  ;;  %v420_v14 = vpop.permute.xlu1 %419 }
 0x268   : > { %v424_v15 = vmul.f32 %v420_v14, %v1169_v28  ;;  %v509_v28 = vld [vmem:[%s1274_s2] sm:$0x3] }
 0x269   : > { %v429_v33 = vadd.f32 %v428_v11, %v427_v10 }
 0x26a   : > { %v434_v17 = vsel %vm426_vm9, %v424_v15, 0.0 }
 0x26b   : > { %v430_v50 = vrot.slane %v429_v33, 2  ;;  %v435_v19 = vrot.slane %v434_v17, 4  ;;  %v494_v20 = vpop.permute.xlu1 %493 }
 0x26c   : > { %v496_v21 = vadd.f32 %v494_v20, %v473_v16 }
 0x26d   : > { %v431_v22 = vadd.f32 %v430_v50, %v429_v33  ;;  %v436_v23 = vadd.f32 %v435_v19, %v434_v17 }
 0x26e   : > { %498 = vst.msk [vmem:[#allocation4] sm:$0x3] %vm343_vm12, %v496_v21 }
 0x26f   : > { %v432_v25 = vrot.slane %v431_v22, 1  ;;  %v437_v54 = vrot.slane %v436_v23, 2 }
 0x271   : > { %v438_v26 = vadd.f32 %v437_v54, %v436_v23  ;;  %v433_v27 = vadd.f32 %v432_v25, %v431_v22 }
 0x273   : > { %v439_v29 = vrot.slane %v438_v26, 1  ;;  %v441_v24 = vsel %vm426_vm9, %v433_v27, 0.0 }
 0x275   : > { %v440_v31 = vadd.f32 %v439_v29, %v438_v26  ;;  %v508_v32 = vld [vmem:[#allocation4] sm:$0x3] }
 0x276   : > { %v510_v34 = vsub.f32 %v508_v32, %v509_v28 }
 0x277   : > { %v442_v36 = vsel %vm426_vm9, %v440_v31, 0.0 }
 0x278   : > { %v443_v37 = vadd.f32 %v442_v36, %v441_v24  ;;  %v511_v38 = vand.u32 2147483647, %v510_v34 }
 0x27a   : > { %v444_v39 = vadd.f32 %v443_v37, %v425_v35  ;;  %v512_v41 = vsel %vm343_vm12, %v511_v38, 0.0 }
 0x27b   : > { %v513_v42 = vrot.slane %v512_v41, 4  ;;  %v595_v46 = vpop.xlane.xlu0 %594 }
 0x27c   : > { %446 = vst.msk [vmem:[#allocation2] sm:$0x1] %vm340_vm13, %v444_v39  ;;  %v596_v51 = vmul.f32 %v595_v46, %v542_v44 }
 0x27d   : > { %v514_v43 = vadd.f32 %v513_v42, %v512_v41 }
 0x27e   : > { %v634_v55 = vrot.slane %v596_v51, %v606_v48 }
 0x27f   : > { %v515_v45 = vrot.slane %v514_v43, 2 }
 0x280   : > { %v635_v57 = vmul.f32 %v634_v55, %v630_v0 }
 0x281   : > { %v516_v49 = vadd.f32 %v515_v45, %v514_v43 }
 0x283   : > { %v504_v52 = vld [vmem:[#allocation2] sm:$0x1]  ;;  %v517_v53 = vrot.slane %v516_v49, 1 }
 0x284   : > { %v507_v56 = vmul.f32 %v876_v47, %v504_v52 }
 0x285   : > { %v518_v59 = vadd.f32 %v517_v53, %v516_v49 }
 0x286   : > { %v607_v58 = vrot.slane %v507_v56, %v606_v48 }
 0x287   : > { %v519_v60 = vmul.f32 0.5, %v518_v59 }
 0x288   : > { %609 = vperm.xlu0 %861, %v607_v58  }
 0x28c   : > { %618 = vperm.xlu0 %861, %v519_v60  }
 0x2aa   : > { %v534_v61 = vpop.xlane.xlu1 %533 }
 0x2ab   : > { %v535_v62 = vsel %vm531_vm15, %v534_v61, 0.0 }
 0x2ac   : > { %v536_v63 = vrot.slane %v535_v62, 4 }
 0x2ae   : > { %v537_v2 = vadd.f32 %v536_v63, %v535_v62 }
 0x2b0   : > { %v538_v12 = vrot.slane %v537_v2, 2 }
 0x2b2   : > { %v539_v3 = vadd.f32 %v538_v12, %v537_v2 }
 0x2b4   : > { %v540_v4 = vrot.slane %v539_v3, 1 }
 0x2b6   : > { %v541_v5 = vadd.f32 %v540_v4, %v539_v3 }
 0x2b8   : > { %v543_v9 = vmul.f32 %v542_v44, %v541_v5 }
 0x2ba   : > { %v626_v14 = vmul.f32 %v625_v18, %v543_v9 }
 0x307   : > { %v610_v6 = vpop.permute.xlu0 %609 }
 0x308   : > { %v612_v1 = vmul.f32 %v610_v6, %v602_v7 }
 0x30b   : > { %v619_v10 = vpop.permute.xlu0 %618 }
 0x30c   : > { %v621_v11 = vmul.f32 %v619_v10, %v615_v8 }
 0x30e   : > { %v622_v15 = vadd.f32 %v621_v11, %v612_v1 }
 0x310   : > { %v627_v33 = vadd.f32 %v626_v14, %v622_v15 }
 0x312   : > { %v636_v16 = vadd.f32 %v635_v57, %v627_v33 }
 0x314   : > { %637 = vst [vmem:[%s315_s7] sm:$0xff] %v636_v16 }
 0x315   : > { %905 = shalt.err (!%p902_p3)
}
 0x316   : > { %s906_s19 = scalar_lea.hbm %s1225_s14, 128  ;;  %s910_s22 = scalar_lea.hbm %s1278_s6, 384 }
 0x317   : > { %p907_p5 = scmp.ne.s32.totalorder %s1225_s14, %s906_s19  ;;  %p911_p9 = scmp.lt.u32.totalorder %s1225_s14, %s1278_s6 }
 0x318   : > { %p912_p12 = scmp.lt.u32.totalorder %s910_s22, %s906_s19  ;;  %p914_p11 = scmp.lt.u32.totalorder %s906_s19, %s1225_s14 }
 0x319   : > { %p908_p6 = pnand %p907_p5, %p1060_p4 }
 0x31a   : > { %p913_p10 = por %p912_p12, %p911_p9 }
 0x31b   : > { %p909_p7 = pneg %p908_p6 }
 0x31c   : > { %p915_p13 = por %p914_p11, %p913_p10 }
 0x31e   : > { %p916_p0 = pnand %p915_p13, %p909_p7 }
 0x320   : > { %919 = shalt.err (!%p916_p0)
}
 0x321   : > { %794 = dma.vmem_to_hbm [thread:$0]  (%p1060_p4), %s1227_s9, 128, %s1225_s14, %s639_s15  }
 0x322 PF: > { %p806_p1 = scmp.ge.s32.totalorder %s974_s28, 2  ;;  %s664_s7 = sand.u32 1, %s954_s23  }
 0x323   : > { %s665_s12 = scalar_lea.sflag [#allocation7], %s664_s7 }
 0x324   : > { %p801_p2 = pnand %p806_p1, %p1067_p8 }
 0x326   : > { %949 = dma.done.wait (!%p801_p2), %s665_s12, 128  }
 0x327   : > { %951 = vsyncadd (!%p801_p2), %s665_s12, 4294967168  ;;  %s21_s28 = sadd.s32 1, %s974_s28   ;;  %s1285_s23 = smov %s958_s24 }
 0x328   : > { %p18_p3 = scmp.ge.s32.totalorder %s21_s28, 5   ;;  %s1286_s24 = smov %s962_s25 }
 0x329   : > { %s1287_s25 = smov %s1073_s11  ;;  %s1288_s26 = smov %s970_s27 }
 0x32a   : > { %s1289_s27 = smov %s1291_s30  ;;  %20 = sbr.rel (!%p18_p3) target bundleno = 7 (0x7), region = 98 }
 0x331   :  { %670 = vsyncpa [#allocation7], 1 }
 0x332   :  { %672 = vsyncpa [#allocation7 + $0x1], 1 }
 0x333   :  { %673 = vsyncpa [#allocation8], 1 }
 0x334   :  { %675 = vsyncpa [#allocation8 + $0x1], 1 }

</bundles_post_ra>
